<compile_context>
chip_gen: v7x
topology: tpu7x:2x2x1
jax: 0.10.0
libtpu: 0.0.40
codegen_flags: <defaults>
</compile_context>

<pallas_src>
import jax
import jax.numpy as jnp
from jax import lax
from jax.experimental import pallas as pl
from jax.experimental.pallas import tpu as pltpu

HIDDEN = 32        # hidden_size
OUTPUT = 32        # output_size (== embedding_dim == hidden_size, see note)
EMBED = 32         # embedding_dim
MAX_LENGTH = 8     # max_length


def attention_decoder_decode(tokens, decoder_hidden, encoder_outputs, packed):
    """Run T teacher-forced decode steps in ONE pallas_call (grid=(1,), in-kernel loop).

    tokens: (T,) int32; decoder_hidden: ((1,1,H), (1,1,H)); encoder_outputs: (L, H).
    Returns (logp (T,O), (hT (1,1,H), cT (1,1,H)), attn_weights (T,L)).
    """
    H, E, O, L = HIDDEN, EMBED, OUTPUT, MAX_LENGTH
    h0, c0 = decoder_hidden
    T = int(tokens.shape[0])
    T_pad = max(8, ((T + 7) // 8) * 8)                         # sublane-friendly padding

    tok_pad = jnp.zeros((T_pad, 1), jnp.int32).at[:T, 0].set(tokens.astype(jnp.int32))
    state0 = jnp.concatenate([h0[0], c0[0]], axis=1)           # (1, 2H) packed initial state

    def kernel(tok_ref, emb_ref, enc_ref, state0_ref,
               wx_ref, wh_ref, wmisc_ref, bias_ref,
               out_ref, xproj_sc):
        # Zero the whole output block once (covers the padded rows).
        out_ref[...] = jnp.zeros_like(out_ref)

        # ---- Hoisted, token-only work: ONE batched matmul pair for all T steps ----
        # embedded = embedding(input); dropout == identity (eval mode).
        tok = tok_ref[...]                                                     # (T_pad, 1)
        onehot = (lax.broadcasted_iota(jnp.int32, (T_pad, O), 1) == tok).astype(jnp.float32)
        x_all = jnp.dot(onehot, emb_ref[...], preferred_element_type=jnp.float32)   # (T_pad, E)
        # x @ [comb_wx | attn_wx] for every step at once (M=T matmul, off the chain).
        xproj_sc[...] = jnp.dot(x_all, wx_ref[...], preferred_element_type=jnp.float32)

        # ---- Hoisted VMEM-resident weights / biases (all slices 128-lane aligned) ----
        wh = wh_ref[...]                      # (H, 256): [w_hh_T | attn_wh | pad]
        w_ih = wmisc_ref[:, 0:128]            # (H, 4H)
        comb_wa = wmisc_ref[:, 128:128 + H]   # (H, H)
        out_w = wmisc_ref[:, 256:256 + O]     # (H, O)
        bias = bias_ref[...]                  # (1, 512)
        gate_b = bias[:, 0:128]
        comb_b = bias[:, 128:128 + H]
        out_b = bias[:, 256:256 + O]
        attn_b = bias[:, 384:384 + L]
        enc = enc_ref[...]                    # (L, H)
        pad_row = jnp.zeros((1, 128 - (O + 2 * H + L)), jnp.float32)

        # (h, c) carried in vregs across the fully-unrolled steps.
        h = state0_ref[:, 0:H]
        c = state0_ref[:, H:2 * H]

        for t in range(T):                                    # static unroll (T <= 8)
            xp = xproj_sc[pl.ds(t, 1), :]                     # (1, 256) precomputed x-proj

            # h-dependent fused projection: h @ [w_hh_T | attn_wh]  (one MXU push).
            h_proj = jnp.dot(h, wh, preferred_element_type=jnp.float32)        # (1, 256)

            # attn_weights = softmax( attn(cat(embedded, h)) )
            attn_logits = xp[:, 128:128 + L] + h_proj[:, 128:128 + L] + attn_b
            m = jnp.max(attn_logits, axis=1, keepdims=True)
            e = jnp.exp(attn_logits - m)
            attn_w = e * pl.reciprocal(jnp.sum(e, axis=1, keepdims=True), approx=False)

            # attn_applied = bmm(attn_weights, encoder_outputs)
            attn_applied = jnp.dot(attn_w, enc, preferred_element_type=jnp.float32)  # (1, H)

            # output = relu( attn_combine(cat(embedded, attn_applied)) )
            comb = (xp[:, 0:H]
                    + jnp.dot(attn_applied, comb_wa, preferred_element_type=jnp.float32)
                    + comb_b)
            lstm_in = jnp.maximum(comb, 0.0)

            # Single-step LSTM (PyTorch gate order i, f, g, o); b_ih+b_hh pre-summed.
            gates = (jnp.dot(lstm_in, w_ih, preferred_element_type=jnp.float32)
                     + h_proj[:, 0:128] + gate_b)                              # (1, 4H)
            sig = jax.nn.sigmoid(gates)        # one pass over the whole (1,128) gate vector
            tnh = jnp.tanh(gates)
            i_g = sig[:, 0:H]
            f_g = sig[:, H:2 * H]
            g_g = tnh[:, 2 * H:3 * H]
            o_g = sig[:, 3 * H:4 * H]
            c = f_g * c + i_g * g_g
            h = o_g * jnp.tanh(c)

            # output = log_softmax( out(h) )
            logits = jnp.dot(h, out_w, preferred_element_type=jnp.float32) + out_b
            m2 = jnp.max(logits, axis=1, keepdims=True)
            z = logits - m2
            logp = z - jnp.log(jnp.sum(jnp.exp(z), axis=1, keepdims=True))

            # One lane-dense 128-wide row, single store per step.
            row = jnp.concatenate([logp, h, c, attn_w, pad_row], axis=1)       # (1, 128)
            out_ref[pl.ds(t, 1), :] = row

    const2 = lambda i: (0, 0)
    grid_spec = pltpu.PrefetchScalarGridSpec(
        num_scalar_prefetch=0,
        grid=(1,),
        in_specs=[
            pl.BlockSpec((T_pad, 1), const2),                 # tokens
            pl.BlockSpec((OUTPUT, EMBED), const2),            # embedding table
            pl.BlockSpec((MAX_LENGTH, HIDDEN), const2),       # encoder outputs
            pl.BlockSpec((1, 2 * HIDDEN), const2),            # initial [h | c]
            pl.BlockSpec((EMBED, 256), const2),               # x-weight slab
            pl.BlockSpec((HIDDEN, 256), const2),              # h-weight slab
            pl.BlockSpec((HIDDEN, 384), const2),              # misc weight slab
            pl.BlockSpec((1, 512), const2),                   # bias slab
        ],
        out_specs=pl.BlockSpec((T_pad, 128), const2),
        scratch_shapes=[pltpu.VMEM((T_pad, 256), jnp.float32)],   # hoisted x-projection rows
    )
    out = pl.pallas_call(
        kernel,
        out_shape=jax.ShapeDtypeStruct((T_pad, 128), jnp.float32),
        grid_spec=grid_spec,
        compiler_params=pltpu.CompilerParams(
            dimension_semantics=("arbitrary",)),
    )(tok_pad, packed["embedding"], encoder_outputs, state0,
      packed["wx"], packed["wh"], packed["wmisc"], packed["bias"])

    logp = out[:T, 0:O]
    h_seq = out[:T, O:O + H]
    c_seq = out[:T, O + H:O + 2 * H]
    attn_w = out[:T, O + 2 * H:O + 2 * H + L]
    hT = h_seq[-1:][None]                                     # (1,1,H)
    cT = c_seq[-1:][None]
    return logp, (hT, cT), attn_w


def attention_decoder_forward(token, decoder_hidden, encoder_outputs, packed):
    """Single decode step: matches AttentionDecoder.forward(input, decoder_hidden, encoder_outputs)."""
    tokens = jnp.reshape(token, (-1,)).astype(jnp.int32)[:1]  # (1,)
    return attention_decoder_decode(tokens, decoder_hidden, encoder_outputs, packed)


def make_params(key):
    """Raw (torch-layout, pre-transposed/split) parameters."""
    ks = jax.random.split(key, 12)
    s = 0.1
    H, E, O, L = HIDDEN, EMBED, OUTPUT, MAX_LENGTH
    attn_w = jax.random.normal(ks[0], (L, E + H), jnp.float32) * s        # attn: (E+H)->L
    comb_w = jax.random.normal(ks[1], (H, E + H), jnp.float32) * s        # attn_combine: (E+H)->H
    w_ih = jax.random.normal(ks[2], (4 * H, H), jnp.float32) * s          # lstm input->gates
    w_hh = jax.random.normal(ks[3], (4 * H, H), jnp.float32) * s          # lstm hidden->gates
    out_w = jax.random.normal(ks[4], (O, H), jnp.float32) * s             # out: H->O
    return {
        "embedding": jax.random.normal(ks[5], (O, E), jnp.float32) * s,
        "attn_wx": attn_w[:, :E].T, "attn_wh": attn_w[:, E:].T,
        "attn_b": jax.random.normal(ks[6], (1, L), jnp.float32) * s,
        "comb_wx": comb_w[:, :E].T, "comb_wa": comb_w[:, E:].T,
        "comb_b": jax.random.normal(ks[7], (1, H), jnp.float32) * s,
        "w_ih_T": w_ih.T, "w_hh_T": w_hh.T,
        "b_ih": jax.random.normal(ks[8], (1, 4 * H), jnp.float32) * s,
        "b_hh": jax.random.normal(ks[9], (1, 4 * H), jnp.float32) * s,
        "out_w_T": out_w.T,
        "out_b": jax.random.normal(ks[10], (1, O), jnp.float32) * s,
    }


def pack_params(p):
    """Pack the tiny parameters into lane-dense, 128-aligned VMEM slabs (+ fold biases)."""
    H, E, O, L = HIDDEN, EMBED, OUTPUT, MAX_LENGTH

    wx = jnp.zeros((E, 256), jnp.float32)                      # [comb_wx@0 | attn_wx@128]
    wx = wx.at[:, 0:H].set(p["comb_wx"])
    wx = wx.at[:, 128:128 + L].set(p["attn_wx"])

    wh = jnp.zeros((H, 256), jnp.float32)                      # [w_hh_T@0 | attn_wh@128]
    wh = wh.at[:, 0:4 * H].set(p["w_hh_T"])
    wh = wh.at[:, 128:128 + L].set(p["attn_wh"])

    wmisc = jnp.zeros((H, 384), jnp.float32)                   # [w_ih_T@0 | comb_wa@128 | out_w_T@256]
    wmisc = wmisc.at[:, 0:4 * H].set(p["w_ih_T"])
    wmisc = wmisc.at[:, 128:128 + H].set(p["comb_wa"])
    wmisc = wmisc.at[:, 256:256 + O].set(p["out_w_T"])

    bias = jnp.zeros((1, 512), jnp.float32)                    # each section 128-aligned
    bias = bias.at[:, 0:4 * H].set(p["b_ih"] + p["b_hh"])      # fused LSTM gate bias
    bias = bias.at[:, 128:128 + H].set(p["comb_b"])
    bias = bias.at[:, 256:256 + O].set(p["out_b"])
    bias = bias.at[:, 384:384 + L].set(p["attn_b"])

    return {"embedding": p["embedding"], "wx": wx, "wh": wh, "wmisc": wmisc, "bias": bias}


def reference_step(tok, h, c, enc, p):
    """Pure-JAX reference for one decode step (same math as the PyTorch module)."""
    x = p["embedding"][tok][None, :]
    a = x @ p["attn_wx"] + h @ p["attn_wh"] + p["attn_b"]
    aw = jax.nn.softmax(a, axis=1)
    app = aw @ enc
    li = jnp.maximum(x @ p["comb_wx"] + app @ p["comb_wa"] + p["comb_b"], 0.0)
    g = li @ p["w_ih_T"] + p["b_ih"] + h @ p["w_hh_T"] + p["b_hh"]
    H = HIDDEN
    i_ = jax.nn.sigmoid(g[:, :H])
    f_ = jax.nn.sigmoid(g[:, H:2 * H])
    g_ = jnp.tanh(g[:, 2 * H:3 * H])
    o_ = jax.nn.sigmoid(g[:, 3 * H:])
    c1 = f_ * c + i_ * g_
    h1 = o_ * jnp.tanh(c1)
    lo = h1 @ p["out_w_T"] + p["out_b"]
    return jax.nn.log_softmax(lo, axis=1), h1, c1, aw


if __name__ == "__main__":
    key = jax.random.PRNGKey(0)
    pkey, ekey = jax.random.split(key)
    raw = make_params(pkey)
    packed = pack_params(raw)

    encoder_outputs = jax.random.normal(ekey, (MAX_LENGTH, HIDDEN), jnp.float32)
    h0 = jnp.zeros((1, 1, HIDDEN), jnp.float32)                 # init_hidden()
    c0 = jnp.zeros((1, 1, HIDDEN), jnp.float32)

    # --- single step: the module's forward() semantics ---
    token = jnp.array([[3]], dtype=jnp.int32)
    logp, (h1, c1), attn_w = attention_decoder_forward(token, (h0, c0), encoder_outputs, packed)
    jax.block_until_ready((logp, h1, c1, attn_w))

    r_logp, r_h1, r_c1, r_aw = reference_step(3, h0[0], c0[0], encoder_outputs, raw)
    assert jnp.allclose(logp, r_logp, atol=1e-5)
    assert jnp.allclose(h1[0], r_h1, atol=1e-5)
    assert jnp.allclose(c1[0], r_c1, atol=1e-5)
    assert jnp.allclose(attn_w, r_aw, atol=1e-5)

    # --- whole teacher-forced decode loop inside ONE pallas_call (in-kernel step loop) ---
    tokens = jnp.array([3, 1, 4, 1, 5, 9], dtype=jnp.int32) % OUTPUT
    logp_seq, (hT, cT), attn_seq = attention_decoder_decode(
        tokens, (h0, c0), encoder_outputs, packed)
    jax.block_until_ready((logp_seq, hT, cT, attn_seq))

    h, c = h0[0], c0[0]
    for t in range(int(tokens.shape[0])):
        r_logp, h, c, r_aw = reference_step(int(tokens[t]), h, c, encoder_outputs, raw)
        assert jnp.allclose(logp_seq[t:t + 1], r_logp, atol=1e-5)
        assert jnp.allclose(attn_seq[t:t + 1], r_aw, atol=1e-5)
    assert jnp.allclose(hT[0], h, atol=1e-5)
    assert jnp.allclose(cT[0], c, atol=1e-5)

    print("KERNEL_OK")
</pallas_src>

<mosaic_0001>
module attributes {stable_mosaic.version = 11 : i64} {
  func.func @kernel(%arg0: i32, %arg1: memref<8x1xi32, #tpu.memory_space<vmem>>, %arg2: memref<32x32xf32, #tpu.memory_space<vmem>>, %arg3: memref<8x32xf32, #tpu.memory_space<vmem>>, %arg4: memref<1x64xf32, #tpu.memory_space<vmem>>, %arg5: memref<32x256xf32, #tpu.memory_space<vmem>>, %arg6: memref<32x256xf32, #tpu.memory_space<vmem>>, %arg7: memref<32x384xf32, #tpu.memory_space<vmem>>, %arg8: memref<1x512xf32, #tpu.memory_space<vmem>>, %arg9: memref<8x128xf32, #tpu.memory_space<vmem>>, %arg10: memref<8x256xf32, #tpu.memory_space<vmem>>) attributes {dimension_semantics = [#tpu.dimension_semantics<arbitrary>], iteration_bounds = array<i64: 1>, scalar_prefetch = 0 : i64, scratch_operands = 1 : i64, tpu.core_type = #tpu.core_type<tc>, window_params = [{pipeline_mode = #tpu.pipeline_mode<synchronous>, transform_indices = @transform_0, window_bounds = array<i64: 8, 1>}, {pipeline_mode = #tpu.pipeline_mode<synchronous>, transform_indices = @transform_1, window_bounds = array<i64: 32, 32>}, {pipeline_mode = #tpu.pipeline_mode<synchronous>, transform_indices = @transform_2, window_bounds = array<i64: 8, 32>}, {pipeline_mode = #tpu.pipeline_mode<synchronous>, transform_indices = @transform_3, window_bounds = array<i64: 1, 64>}, {pipeline_mode = #tpu.pipeline_mode<synchronous>, transform_indices = @transform_4, window_bounds = array<i64: 32, 256>}, {pipeline_mode = #tpu.pipeline_mode<synchronous>, transform_indices = @transform_5, window_bounds = array<i64: 32, 256>}, {pipeline_mode = #tpu.pipeline_mode<synchronous>, transform_indices = @transform_6, window_bounds = array<i64: 32, 384>}, {pipeline_mode = #tpu.pipeline_mode<synchronous>, transform_indices = @transform_7, window_bounds = array<i64: 1, 512>}, {pipeline_mode = #tpu.pipeline_mode<synchronous>, transform_indices = @transform_8, window_bounds = array<i64: 8, 128>}]} {
    %cst = arith.constant 0.000000e+00 : f32
    %0 = vector.broadcast %cst : f32 to vector<8x128xf32>
    %c0 = arith.constant 0 : index
    %c0_0 = arith.constant 0 : index
    %1 = vector.load %arg9[%c0, %c0_0] : memref<8x128xf32, #tpu.memory_space<vmem>>, vector<8x128xf32>
    tpu.vector_store %arg9[%c0, %c0_0], %0 {strides = array<i32>} : memref<8x128xf32, #tpu.memory_space<vmem>>, vector<8x128xf32>,
    %c0_1 = arith.constant 0 : index
    %c0_2 = arith.constant 0 : index
    %2 = vector.load %arg1[%c0_1, %c0_2] : memref<8x1xi32, #tpu.memory_space<vmem>>, vector<8x1xi32>
    %3 = tpu.iota {dimensions = array<i32: 1>} : vector<8x32xi32>
    %4 = vector.broadcast %2 : vector<8x1xi32> to vector<8x32xi32>
    %5 = arith.cmpi eq, %3, %4 : vector<8x32xi32>
    %6 = arith.extui %5 : vector<8x32xi1> to vector<8x32xi32>
    %7 = arith.sitofp %6 : vector<8x32xi32> to vector<8x32xf32>
    %c0_3 = arith.constant 0 : index
    %c0_4 = arith.constant 0 : index
    %8 = vector.load %arg2[%c0_3, %c0_4] : memref<32x32xf32, #tpu.memory_space<vmem>>, vector<32x32xf32>
    %cst_5 = arith.constant dense<0.000000e+00> : vector<8x32xf32>
    %9 = tpu.matmul %7, %8, %cst_5 {dimension_numbers = #tpu.dot_dimension_numbers<[1], [0], [0], [1], [0, 0, 1, 1], [], []>} : vector<8x32xf32>, vector<32x32xf32>, vector<8x32xf32> -> vector<8x32xf32>
    %c0_6 = arith.constant 0 : index
    %c0_7 = arith.constant 0 : index
    %10 = vector.load %arg5[%c0_6, %c0_7] : memref<32x256xf32, #tpu.memory_space<vmem>>, vector<32x256xf32>
    %cst_8 = arith.constant dense<0.000000e+00> : vector<8x256xf32>
    %11 = tpu.matmul %9, %10, %cst_8 {dimension_numbers = #tpu.dot_dimension_numbers<[1], [0], [0], [1], [0, 0, 1, 1], [], []>} : vector<8x32xf32>, vector<32x256xf32>, vector<8x256xf32> -> vector<8x256xf32>
    %c0_9 = arith.constant 0 : index
    %c0_10 = arith.constant 0 : index
    %12 = vector.load %arg10[%c0_9, %c0_10] : memref<8x256xf32, #tpu.memory_space<vmem>>, vector<8x256xf32>
    tpu.vector_store %arg10[%c0_9, %c0_10], %11 {strides = array<i32>} : memref<8x256xf32, #tpu.memory_space<vmem>>, vector<8x256xf32>,
    %c0_11 = arith.constant 0 : index
    %c0_12 = arith.constant 0 : index
    %13 = vector.load %arg6[%c0_11, %c0_12] : memref<32x256xf32, #tpu.memory_space<vmem>>, vector<32x256xf32>
    %c0_13 = arith.constant 0 : index
    %c0_14 = arith.constant 0 : index
    %14 = vector.load %arg7[%c0_13, %c0_14] : memref<32x384xf32, #tpu.memory_space<vmem>>, vector<32x128xf32>
    %c0_15 = arith.constant 0 : index
    %c128 = arith.constant 128 : index
    %15 = vector.load %arg7[%c0_15, %c128] : memref<32x384xf32, #tpu.memory_space<vmem>>, vector<32x32xf32>
    %c0_16 = arith.constant 0 : index
    %c256 = arith.constant 256 : index
    %16 = vector.load %arg7[%c0_16, %c256] : memref<32x384xf32, #tpu.memory_space<vmem>>, vector<32x32xf32>
    %c0_17 = arith.constant 0 : index
    %c0_18 = arith.constant 0 : index
    %17 = vector.load %arg8[%c0_17, %c0_18] : memref<1x512xf32, #tpu.memory_space<vmem>>, vector<1x512xf32>
    %18 = vector.extract_strided_slice %17 {offsets = [0, 0], sizes = [1, 128], strides = [1, 1]} : vector<1x512xf32> to vector<1x128xf32>
    %19 = vector.extract_strided_slice %17 {offsets = [0, 128], sizes = [1, 32], strides = [1, 1]} : vector<1x512xf32> to vector<1x32xf32>
    %20 = vector.extract_strided_slice %17 {offsets = [0, 256], sizes = [1, 32], strides = [1, 1]} : vector<1x512xf32> to vector<1x32xf32>
    %21 = vector.extract_strided_slice %17 {offsets = [0, 384], sizes = [1, 8], strides = [1, 1]} : vector<1x512xf32> to vector<1x8xf32>
    %c0_19 = arith.constant 0 : index
    %c0_20 = arith.constant 0 : index
    %22 = vector.load %arg3[%c0_19, %c0_20] : memref<8x32xf32, #tpu.memory_space<vmem>>, vector<8x32xf32>
    %cst_21 = arith.constant 0.000000e+00 : f32
    %23 = vector.broadcast %cst_21 : f32 to vector<1x24xf32>
    %c0_22 = arith.constant 0 : index
    %c0_23 = arith.constant 0 : index
    %24 = vector.load %arg4[%c0_22, %c0_23] : memref<1x64xf32, #tpu.memory_space<vmem>>, vector<1x32xf32>
    %c0_24 = arith.constant 0 : index
    %c32 = arith.constant 32 : index
    %25 = vector.load %arg4[%c0_24, %c32] : memref<1x64xf32, #tpu.memory_space<vmem>>, vector<1x32xf32>
    %c0_25 = arith.constant 0 : index
    %c0_26 = arith.constant 0 : index
    %26 = vector.load %arg10[%c0_25, %c0_26] : memref<8x256xf32, #tpu.memory_space<vmem>>, vector<1x256xf32>
    %cst_27 = arith.constant dense<0.000000e+00> : vector<1x256xf32>
    %27 = tpu.matmul %24, %13, %cst_27 {dimension_numbers = #tpu.dot_dimension_numbers<[1], [0], [0], [1], [0, 0, 1, 1], [], []>} : vector<1x32xf32>, vector<32x256xf32>, vector<1x256xf32> -> vector<1x256xf32>
    %28 = vector.extract_strided_slice %26 {offsets = [0, 128], sizes = [1, 8], strides = [1, 1]} : vector<1x256xf32> to vector<1x8xf32>
    %29 = vector.extract_strided_slice %27 {offsets = [0, 128], sizes = [1, 8], strides = [1, 1]} : vector<1x256xf32> to vector<1x8xf32>
    %30 = arith.addf %28, %29 : vector<1x8xf32>
    %31 = arith.addf %30, %21 : vector<1x8xf32>
    %cst_28 = arith.constant dense<0xFF800000> : vector<1xf32>
    %32 = vector.multi_reduction <maximumf>, %31, %cst_28 [1] : vector<1x8xf32> to vector<1xf32>
    %33 = vector.shape_cast %32 : vector<1xf32> to vector<1x1xf32>
    %34 = vector.broadcast %33 : vector<1x1xf32> to vector<1x8xf32>
    %35 = arith.subf %31, %34 : vector<1x8xf32>
    %36 = math.exp %35 : vector<1x8xf32>
    %cst_29 = arith.constant dense<0.000000e+00> : vector<1xf32>
    %37 = vector.multi_reduction <add>, %36, %cst_29 [1] : vector<1x8xf32> to vector<1xf32>
    %38 = vector.shape_cast %37 : vector<1xf32> to vector<1x1xf32>
    %39 = tpu.reciprocal %38 : vector<1x1xf32> -> vector<1x1xf32>
    %40 = vector.broadcast %39 : vector<1x1xf32> to vector<1x8xf32>
    %41 = arith.mulf %36, %40 : vector<1x8xf32>
    %cst_30 = arith.constant dense<0.000000e+00> : vector<1x32xf32>
    %42 = tpu.matmul %41, %22, %cst_30 {dimension_numbers = #tpu.dot_dimension_numbers<[1], [0], [0], [1], [0, 0, 1, 1], [], []>} : vector<1x8xf32>, vector<8x32xf32>, vector<1x32xf32> -> vector<1x32xf32>
    %43 = vector.extract_strided_slice %26 {offsets = [0, 0], sizes = [1, 32], strides = [1, 1]} : vector<1x256xf32> to vector<1x32xf32>
    %cst_31 = arith.constant dense<0.000000e+00> : vector<1x32xf32>
    %44 = tpu.matmul %42, %15, %cst_31 {dimension_numbers = #tpu.dot_dimension_numbers<[1], [0], [0], [1], [0, 0, 1, 1], [], []>} : vector<1x32xf32>, vector<32x32xf32>, vector<1x32xf32> -> vector<1x32xf32>
    %45 = arith.addf %43, %44 : vector<1x32xf32>
    %46 = arith.addf %45, %19 : vector<1x32xf32>
    %cst_32 = arith.constant 0.000000e+00 : f32
    %47 = vector.broadcast %cst_32 : f32 to vector<1x32xf32>
    %48 = arith.maximumf %46, %47 : vector<1x32xf32>
    %cst_33 = arith.constant dense<0.000000e+00> : vector<1x128xf32>
    %49 = tpu.matmul %48, %14, %cst_33 {dimension_numbers = #tpu.dot_dimension_numbers<[1], [0], [0], [1], [0, 0, 1, 1], [], []>} : vector<1x32xf32>, vector<32x128xf32>, vector<1x128xf32> -> vector<1x128xf32>
    %50 = vector.extract_strided_slice %27 {offsets = [0, 0], sizes = [1, 128], strides = [1, 1]} : vector<1x256xf32> to vector<1x128xf32>
    %51 = arith.addf %49, %50 : vector<1x128xf32>
    %52 = arith.addf %51, %18 : vector<1x128xf32>
    %53 = arith.negf %52 : vector<1x128xf32>
    %54 = math.exp %53 : vector<1x128xf32>
    %cst_34 = arith.constant 1.000000e+00 : f32
    %55 = vector.broadcast %cst_34 : f32 to vector<1x128xf32>
    %56 = arith.addf %55, %54 : vector<1x128xf32>
    %57 = arith.divf %55, %56 : vector<1x128xf32>
    %58 = math.tanh %52 : vector<1x128xf32>
    %59 = vector.extract_strided_slice %57 {offsets = [0, 0], sizes = [1, 32], strides = [1, 1]} : vector<1x128xf32> to vector<1x32xf32>
    %60 = vector.extract_strided_slice %57 {offsets = [0, 32], sizes = [1, 32], strides = [1, 1]} : vector<1x128xf32> to vector<1x32xf32>
    %61 = vector.extract_strided_slice %58 {offsets = [0, 64], sizes = [1, 32], strides = [1, 1]} : vector<1x128xf32> to vector<1x32xf32>
    %62 = vector.extract_strided_slice %57 {offsets = [0, 96], sizes = [1, 32], strides = [1, 1]} : vector<1x128xf32> to vector<1x32xf32>
    %63 = arith.mulf %60, %25 : vector<1x32xf32>
    %64 = arith.mulf %59, %61 : vector<1x32xf32>
    %65 = arith.addf %63, %64 : vector<1x32xf32>
    %66 = math.tanh %65 : vector<1x32xf32>
    %67 = arith.mulf %62, %66 : vector<1x32xf32>
    %cst_35 = arith.constant dense<0.000000e+00> : vector<1x32xf32>
    %68 = tpu.matmul %67, %16, %cst_35 {dimension_numbers = #tpu.dot_dimension_numbers<[1], [0], [0], [1], [0, 0, 1, 1], [], []>} : vector<1x32xf32>, vector<32x32xf32>, vector<1x32xf32> -> vector<1x32xf32>
    %69 = arith.addf %68, %20 : vector<1x32xf32>
    %cst_36 = arith.constant dense<0xFF800000> : vector<1xf32>
    %70 = vector.multi_reduction <maximumf>, %69, %cst_36 [1] : vector<1x32xf32> to vector<1xf32>
    %71 = vector.shape_cast %70 : vector<1xf32> to vector<1x1xf32>
    %72 = vector.broadcast %71 : vector<1x1xf32> to vector<1x32xf32>
    %73 = arith.subf %69, %72 : vector<1x32xf32>
    %74 = math.exp %73 : vector<1x32xf32>
    %cst_37 = arith.constant dense<0.000000e+00> : vector<1xf32>
    %75 = vector.multi_reduction <add>, %74, %cst_37 [1] : vector<1x32xf32> to vector<1xf32>
    %76 = vector.shape_cast %75 : vector<1xf32> to vector<1x1xf32>
    %77 = math.log %76 : vector<1x1xf32>
    %78 = vector.broadcast %77 : vector<1x1xf32> to vector<1x32xf32>
    %79 = arith.subf %73, %78 : vector<1x32xf32>
    %80 = tpu.concatenate %79, %67, %65, %41, %23 in 1 : vector<1x32xf32>, vector<1x32xf32>, vector<1x32xf32>, vector<1x8xf32>, vector<1x24xf32> -> vector<1x128xf32>
    %c0_38 = arith.constant 0 : index
    %c0_39 = arith.constant 0 : index
    %81 = vector.load %arg9[%c0_38, %c0_39] : memref<8x128xf32, #tpu.memory_space<vmem>>, vector<1x128xf32>
    tpu.vector_store %arg9[%c0_38, %c0_39], %80 {strides = array<i32>} : memref<8x128xf32, #tpu.memory_space<vmem>>, vector<1x128xf32>,
    return
  }
  func.func @transform_0(%arg0: i32) -> (i32, i32) {
    %c0_i32 = arith.constant 0 : i32
    %c0_i32_0 = arith.constant 0 : i32
    %c0_i32_1 = arith.constant 0 : i32
    return %c0_i32, %c0_i32_0 : i32, i32
  }
  func.func @transform_1(%arg0: i32) -> (i32, i32) {
    %c0_i32 = arith.constant 0 : i32
    %c0_i32_0 = arith.constant 0 : i32
    %c0_i32_1 = arith.constant 0 : i32
    return %c0_i32, %c0_i32_0 : i32, i32
  }
  func.func @transform_2(%arg0: i32) -> (i32, i32) {
    %c0_i32 = arith.constant 0 : i32
    %c0_i32_0 = arith.constant 0 : i32
    %c0_i32_1 = arith.constant 0 : i32
    return %c0_i32, %c0_i32_0 : i32, i32
  }
  func.func @transform_3(%arg0: i32) -> (i32, i32) {
    %c0_i32 = arith.constant 0 : i32
    %c0_i32_0 = arith.constant 0 : i32
    %c0_i32_1 = arith.constant 0 : i32
    return %c0_i32, %c0_i32_0 : i32, i32
  }
  func.func @transform_4(%arg0: i32) -> (i32, i32) {
    %c0_i32 = arith.constant 0 : i32
    %c0_i32_0 = arith.constant 0 : i32
    %c0_i32_1 = arith.constant 0 : i32
    return %c0_i32, %c0_i32_0 : i32, i32
  }
  func.func @transform_5(%arg0: i32) -> (i32, i32) {
    %c0_i32 = arith.constant 0 : i32
    %c0_i32_0 = arith.constant 0 : i32
    %c0_i32_1 = arith.constant 0 : i32
    return %c0_i32, %c0_i32_0 : i32, i32
  }
  func.func @transform_6(%arg0: i32) -> (i32, i32) {
    %c0_i32 = arith.constant 0 : i32
    %c0_i32_0 = arith.constant 0 : i32
    %c0_i32_1 = arith.constant 0 : i32
    return %c0_i32, %c0_i32_0 : i32, i32
  }
  func.func @transform_7(%arg0: i32) -> (i32, i32) {
    %c0_i32 = arith.constant 0 : i32
    %c0_i32_0 = arith.constant 0 : i32
    %c0_i32_1 = arith.constant 0 : i32
    return %c0_i32, %c0_i32_0 : i32, i32
  }
  func.func @transform_8(%arg0: i32) -> (i32, i32) {
    %c0_i32 = arith.constant 0 : i32
    %c0_i32_0 = arith.constant 0 : i32
    %c0_i32_1 = arith.constant 0 : i32
    return %c0_i32, %c0_i32_0 : i32, i32
  }
}

</mosaic_0001>

<bundles_post_ra>
// kernel: tpu_custom_call.1
= control target key start
LH: loop header
LB: loop body
LE: loop exit
PB: predicated region body
PF: predicated region fallthrough
CT: control target
= control target key end

     0   :  { %13 = vsyncpa [#allocation4], 0  ;;  %s1227_s0 = inlined_call_operand.vmem [shape: s32[8,1], index: 0, kind: input, shape index: {}]   ;;  %s1228_s1 = inlined_call_operand.hbm [shape: f32[32,32], index: 1, kind: input, shape index: {}]   ;;  %s1229_s2 = inlined_call_operand.vmem [shape: f32[8,32], index: 2, kind: input, shape index: {}]   ;;  %s1230_s3 = inlined_call_operand.vmem [shape: f32[1,64], index: 3, kind: input, shape index: {}]   ;;  %s1231_s4 = inlined_call_operand.hbm [shape: f32[32,256], index: 4, kind: input, shape index: {}]   ;;  %s1232_s5 = inlined_call_operand.hbm [shape: f32[32,256], index: 5, kind: input, shape index: {}]   ;;  %s1233_s6 = inlined_call_operand.hbm [shape: f32[32,384], index: 6, kind: input, shape index: {}]   ;;  %s1234_s7 = inlined_call_operand.vmem [shape: f32[1,512], index: 7, kind: input, shape index: {}]   ;;  %s1235_s8 = inlined_call_operand.hbm [shape: f32[8,128], index: 8, kind: output, shape index: {}]  }
   0x1   :  { %14 = vsyncpa [#allocation7], 0 }
   0x2   :  { %15 = vsyncpa [#allocation10], 0 }
   0x3   :  { %16 = vsyncpa [#allocation5], 0  ;;  %s1030_s27 = smov [#allocation6]   ;;  %s912_s9 = scalar_lea.hbm %s1231_s4, 1024 }
   0x4   :  { %s40_s28 = sshll.u32 %s1030_s27, 4  ;;  %p913_p0 = scmp.ne.s32.totalorder %s1231_s4, %s912_s9  ;;  %s41_s28 = int_to_ptr.vmem [resolvable:$true] %s40_s28 }
   0x5   :  { %p916_p1 = scmp.lt.u32.totalorder %s912_s9, %s1231_s4 }
   0x7   :  { %p918_p2 = pnand %p916_p1, %p913_p0 }
   0x9   :  { %921 = shalt.err (!%p918_p2)
}
   0xa   :  { %s922_s14 = scalar_lea.vmem %s41_s28, 1024  ;;  %p927_p4 = scmp.lt.s32.totalorder %s41_s28, %s41_s28 }
   0xb   :  { %p923_p3 = scmp.ne.s32.totalorder %s41_s28, %s922_s14  ;;  %p928_p5 = scmp.lt.s32.totalorder %s922_s14, %s922_s14 }
   0xd   :  { %p929_p6 = por %p928_p5, %p927_p4 }
   0xf   :  { %p930_p7 = pnand %p929_p6, %p923_p3 }
  0x11   :  { %933 = shalt.err (!%p930_p7)
}
  0x12   :  { %s1031_s15 = smov 256   ;;  %s1032_s16 = smov 16  }
  0x13   :  { %46 = dma.hbm_to_vmem [thread:$0]  %s1231_s4, 1024, %s41_s28, [#allocation7], %s1031_s15, %s1031_s15, %s1032_s16  }
  0x14   :  { %s1033_s19 = smov [#allocation3]   ;;  %s934_s23 = scalar_lea.hbm %s1228_s1, 512 }
  0x15   :  { %s24_s20 = sshll.u32 %s1033_s19, 4  ;;  %p935_p8 = scmp.ne.s32.totalorder %s1228_s1, %s934_s23  ;;  %s25_s20 = int_to_ptr.vmem [resolvable:$true] %s24_s20 }
  0x16   :  { %p938_p9 = scmp.lt.u32.totalorder %s934_s23, %s1228_s1 }
  0x18   :  { %p940_p10 = pnand %p938_p9, %p935_p8 }
  0x1a   :  { %943 = shalt.err (!%p940_p10)
}
  0x1b   :  { %s944_s29 = scalar_lea.vmem %s25_s20, 512  ;;  %p949_p12 = scmp.lt.s32.totalorder %s25_s20, %s25_s20 }
  0x1c   :  { %p945_p11 = scmp.ne.s32.totalorder %s25_s20, %s944_s29  ;;  %p950_p13 = scmp.lt.s32.totalorder %s944_s29, %s944_s29 }
  0x1e   :  { %p951_p0 = por %p950_p13, %p949_p12 }
  0x20   :  { %p952_p1 = pnand %p951_p0, %p945_p11 }
  0x22   :  { %955 = shalt.err (!%p952_p1)
}
  0x23   :  { %s1034_s4 = smov 128   ;;  %s1035_s28 = smov 8  }
  0x24   :  { %30 = dma.hbm_to_vmem [thread:$0]  %s1228_s1, 512, %s25_s20, [#allocation4], %s1034_s4, %s1034_s4, %s1035_s28  }
  0x25   :  { %s1036_s10 = smov [#allocation8]   ;;  %s1037_s12 = smov [#allocation9]  }
  0x26   :  { %s52_s11 = sshll.u32 %s1036_s10, 4  ;;  %s64_s13 = sshll.u32 %s1037_s12, 4  ;;  %s53_s11 = int_to_ptr.vmem [resolvable:$true] %s52_s11  ;;  %s1120_s13 = int_to_ptr.vmem [resolvable:$true] %s64_s13 }
  0x27   :  { %s956_s18 = scalar_lea.hbm %s1232_s5, 1024 }
  0x28   :  { %p957_p2 = scmp.ne.s32.totalorder %s1232_s5, %s956_s18  ;;  %p960_p3 = scmp.lt.u32.totalorder %s956_s18, %s1232_s5 }
  0x2a   :  { %p962_p4 = pnand %p960_p3, %p957_p2 }
  0x2c   :  { %965 = shalt.err (!%p962_p4)
}
  0x2d   :  { %s966_s1 = scalar_lea.vmem %s53_s11, 1024  ;;  %p971_p6 = scmp.lt.s32.totalorder %s53_s11, %s53_s11 }
  0x2e   :  { %p967_p5 = scmp.ne.s32.totalorder %s53_s11, %s966_s1  ;;  %p972_p7 = scmp.lt.s32.totalorder %s966_s1, %s966_s1 }
  0x30   :  { %p973_p8 = por %p972_p7, %p971_p6 }
  0x32   :  { %p974_p9 = pnand %p973_p8, %p967_p5 }
  0x34   :  { %977 = shalt.err (!%p974_p9)
}
  0x35   :  { %58 = dma.hbm_to_vmem [thread:$0]  %s1232_s5, 1024, %s53_s11, [#allocation7], %s1031_s15, %s1031_s15, %s1032_s16  }
  0x36   :  { %s978_s27 = scalar_lea.hbm %s1233_s6, 1536 }
  0x37   :  { %p979_p10 = scmp.ne.s32.totalorder %s1233_s6, %s978_s27  ;;  %p982_p11 = scmp.lt.u32.totalorder %s978_s27, %s1233_s6 }
  0x39   :  { %p984_p12 = pnand %p982_p11, %p979_p10 }
  0x3b   :  { %987 = shalt.err (!%p984_p12)
}
  0x3c   :  { %s988_s9 = scalar_lea.vmem %s1120_s13, 1536  ;;  %p993_p0 = scmp.lt.s32.totalorder %s1120_s13, %s1120_s13 }
  0x3d   :  { %p989_p13 = scmp.ne.s32.totalorder %s1120_s13, %s988_s9  ;;  %p994_p1 = scmp.lt.s32.totalorder %s988_s9, %s988_s9 }
  0x3f   :  { %p995_p2 = por %p994_p1, %p993_p0 }
  0x41   :  { %p996_p3 = pnand %p995_p2, %p989_p13 }
  0x43   :  { %999 = shalt.err (!%p996_p3)
}
  0x44   :  { %s1038_s5 = smov 384   ;;  %s1039_s15 = smov 24  }
  0x45   :  { %70 = dma.hbm_to_vmem [thread:$0]  %s1233_s6, 1536, %s1120_s13, [#allocation10], %s1038_s5, %s1038_s5, %s1039_s15  }
  0x46   :  { %1022 = dma.done.wait [#allocation4], 512  }
  0x47   :  { %1023 = vsyncadd [#allocation4], 4294966784 }
  0x48   :  { %1024 = dma.done.wait [#allocation7], 2048  }
  0x49   :  { %1025 = vsyncadd [#allocation7], 4294965248 }
  0x4a   :  { %1026 = dma.done.wait [#allocation10], 1536  }
  0x4b   :  { %1027 = vsyncadd [#allocation10], 4294965760  ;;  %v1040_v0 = vmov 0   ;;  %v1041_v1 = vmov 0.0|0.0   ;;  %v1042_v2 = vmov 0.0   ;;  %v86_v3 = vld [vmem:[%s1227_s0] sm:$0xff]  ;;  %v87_v22 = vlaneseq }
  0x4c   :  { %895 = vset.pattern.permute.xlu0 %v1040_v0  ;;  %837 = vmatprep.subr.bf16.mxu0 %v1041_v1  ;;  %85 = vst [vmem:[#allocation11] sm:$0xff] %v1042_v2  ;;  %v95_v4 = vld [vmem:[#allocation3] sm:$0xff]  ;;  %v96_v5 = vld [vmem:[#allocation3 + $0x8] sm:$0xff]  ;;  %v97_v7 = vld [vmem:[#allocation3 + $0x10] sm:$0xff]  ;;  %vm1043_vm0 = vmmov 0   ;;  %vm99_vm1 = vcmask 261120  }
  0x4d   :  { %248 = vmatprep.mubr.f32.mxu1 %v1042_v2  ;;  %90 = vperm.xlu0 %895, %v86_v3   ;;  %v838_v6 = vpack.c.bf16 %v96_v5, %v95_v4  ;;  %v98_v8 = vld [vmem:[#allocation3 + $0x18] sm:$0xff]  ;;  %v174_v10 = vld [vmem:[#allocation6 + $0x8] sm:$0xff]  ;;  %v173_v12 = vld [vmem:[#allocation6] sm:$0xff]  ;;  %v88_v23 = vand.u32 127, %v87_v22  ;;  %vm363_vm3 = vcmask 57344   ;;  %vm375_vm4 = vcmask 64512  }
  0x4e   :  { %796 = vmatprep.mubr.msk.f32.mxu0 %vm1043_vm0, %v1042_v2  ;;  %v841_v9 = vpack.c.bf16 %v98_v8, %v97_v7  ;;  %v176_v11 = vld [vmem:[#allocation6 + $0x18] sm:$0xff]  ;;  %v175_v14 = vld [vmem:[#allocation6 + $0x10] sm:$0xff]  ;;  %v178_v15 = vld [vmem:[#allocation6 + $0x28] sm:$0xff]  ;;  %vm705_vm5 = vcmask 253952   ;;  %s1046_s18 = smov 96   ;;  %vm733_vm6 = vcmask 523264  }
  0x4f   :  { %839 = vmatpush3.bf16.msra.mxu0 %v838_v6  ;;  %v843_v13 = vpack.c.bf16 %v176_v11, %v174_v10  ;;  %v180_v16 = vld [vmem:[#allocation6 + $0x38] sm:$0xff]  ;;  %v845_v17 = vpack.c.bf16 %v175_v14, %v173_v12  ;;  %v177_v19 = vld [vmem:[#allocation6 + $0x20] sm:$0xff]  ;;  %v179_v20 = vld [vmem:[#allocation6 + $0x30] sm:$0xff]  ;;  %vm735_vm7 = vcmask 785408   ;;  %s1047_s19 = smov [#allocation11]   ;;  %vm737_vm8 = vcmask 850944  }
  0x50   :  { %840 = vmatprep.subr.bf16.mxu0 %v1041_v1  ;;  %v847_v18 = vpack.c.bf16 %v180_v16, %v178_v15  ;;  %v849_v21 = vpack.c.bf16 %v179_v20, %v177_v19  ;;  %v258_v26 = vld [vmem:[#allocation8 + $0x8] sm:$0xff]  ;;  %v260_v27 = vld [vmem:[#allocation8 + $0x18] sm:$0xff]  ;;  %v257_v29 = vld [vmem:[#allocation8] sm:$0xff]  ;;  %s746_s21 = sshll.u32 %s1047_s19, 4  ;;  %s747_s21 = int_to_ptr.vmem [resolvable:$true] %s746_s21 }
  0x51   :  { %844 = vmatprep.subr.bf16.mxu1 %v843_v13  ;;  %v851_v28 = vpack.c.bf16 %v260_v27, %v258_v26  ;;  %v259_v30 = vld [vmem:[#allocation8 + $0x10] sm:$0xff]  ;;  %v262_v32 = vld [vmem:[#allocation8 + $0x28] sm:$0xff]  ;;  %v264_v33 = vld [vmem:[#allocation8 + $0x38] sm:$0xff]  ;;  %s1000_s22 = scalar_lea.vmem %s747_s21, 128  ;;  %p1005_p5 = scmp.lt.s32.totalorder %s747_s21, %s747_s21 }
  0x52   :  { %846 = vmatpush1.bf16.msra.mxu1 %v845_v17  ;;  %v853_v31 = vpack.c.bf16 %v259_v30, %v257_v29  ;;  %v261_v34 = vld [vmem:[#allocation8 + $0x20] sm:$0xff]  ;;  %v855_v35 = vpack.c.bf16 %v264_v33, %v262_v32  ;;  %v263_v36 = vld [vmem:[#allocation8 + $0x30] sm:$0xff]  ;;  %v1171_v38 = vld [vmem:[%s1230_s3] sm:$0x1]  ;;  %p1001_p4 = scmp.ne.s32.totalorder %s747_s21, %s1000_s22  ;;  %p1006_p6 = scmp.lt.s32.totalorder %s1000_s22, %s1000_s22 }
  0x53   :  { %842 = vmatpush3.bf16.msra.mxu0 %v841_v9  ;;  %848 = vmatprep.subr.bf16.mxu1 %v847_v18  ;;  %v857_v37 = vpack.c.bf16 %v263_v36, %v261_v34  ;;  %v1186_v45 = vld [vmem:[%s1234_s7] sm:$0xf]  ;;  %v270_v60 = vld [vmem:[#allocation9 + $0x20] sm:$0xff]  ;;  %v271_v0 = vld [vmem:[#allocation9 + $0x38] sm:$0xff]  ;;  %s1045_s7 = smov 32  }
  0x54   :  { %852 = vmatprep.subr.bf16.mxu0 %v851_v28  ;;  %v360_v48 = vrot.slane %v1186_v45, 3  ;;  %v278_v57 = vld [vmem:[%s1229_s2] sm:$0xff]  ;;  %v272_v3 = vld [vmem:[#allocation9 + $0x50] sm:$0xff]  ;;  %v265_v7 = vld [vmem:[#allocation9] sm:$0xff]  ;;  %v523_v13 = vrot.slane %v1186_v45, 1  ;;  %s1044_s2 = smov 64   ;;  %p1007_p7 = por %p1006_p6, %p1005_p5 }
  0x55   :  { %v269_v59 = vld [vmem:[#allocation9 + $0x8] sm:$0xff]  ;;  %v863_v4 = vpack.c.bf16 %v272_v3, %v271_v0  ;;  %v266_v8 = vld [vmem:[#allocation9 + $0x18] sm:$0xff]  ;;  %v267_v10 = vld [vmem:[#allocation9 + $0x30] sm:$0xff] }
  0x56   :  { %850 = vmatpush1.bf16.msra.mxu1 %v849_v21  ;;  %v860_v62 = vpack.c.bf16 %v270_v60, %v269_v59  ;;  %v866_v9 = vpack.c.bf16 %v266_v8, %v265_v7  ;;  %v268_v11 = vld [vmem:[#allocation9 + $0x48] sm:$0xff]  ;;  %v273_v33 = vld [vmem:[#allocation9 + $0x10] sm:$0xff]  ;;  %p1008_p8 = pnand %p1007_p7, %p1001_p4 }
  0x57   :  { %799 = vmatprep.subr.mxu1 %v1042_v2  ;;  %v869_v12 = vpack.c.bf16 %v268_v11, %v267_v10  ;;  %v274_v34 = vld [vmem:[#allocation9 + $0x28] sm:$0xff] }
  0x58   :  { %v872_v36 = vpack.c.bf16 %v274_v34, %v273_v33 }
  0xcc   :  { %v91_v24 = vpop.permute.xlu0 %90 }
  0xcd   :  { %vm92_vm2 = vcmp.eq.s32.totalorder %v88_v23, %v91_v24 }
  0xce   :  { %v757_v25 = vsel %vm92_vm2, 1.0, %v1042_v2 }
  0xcf   :  { %797 = vmatmul.mubr.msk.f32.vlgmr.msra.gmra.mrb[0].mxu0 %vm99_vm1, %v757_v25 }
  0xd0   :  { %348 = vmatprep.mubr.f32.mxu0 %v1042_v2  ;;  %854 = vmatpush1.bf16.msra.mxu0 %v853_v31 }
  0xd1   :  { %856 = vmatprep.subr.bf16.mxu0 %v855_v35  ;;  %v275_v35 = vld [vmem:[#allocation9 + $0x40] sm:$0xff] }
  0xd4   :  { %858 = vmatpush1.bf16.msra.mxu0 %v857_v37  ;;  %v276_v37 = vld [vmem:[#allocation9 + $0x58] sm:$0xff] }
  0xd5   :  { %865 = vmatprep.subr.bf16.mxu0 %v1041_v1 }
  0xd7   :  { %760 = vmatmul.mubr.msk.f32.vlgmr.msra.gmra.mrb[2].mxu0 %vm99_vm1, %v1171_v38 }
  0xd8   :  { %823 = vmatprep.mubr.msk.f32.mxu0 %vm1043_vm0, %v1042_v2  ;;  %867 = vmatpush3.bf16.msra.mxu0 %v866_v9 }
  0xd9   :  { %868 = vmatprep.subr.bf16.mxu0 %v1041_v1 }
  0xdc   :  { %870 = vmatpush3.bf16.msra.mxu0 %v869_v12 }
 0x1a2   :  { %v169_v39 = vpop.f32.mrb[0].mxu0 }
 0x1a3   :  { %v798_v40 = vpop.f32.mrb[1].mxu0  ;;  %759 = vmatmul.mubr.msk.f32.vlgmr.msra.gmra.mrb[0].mxu1 %vm99_vm1, %v169_v39  ;;  %v875_v39 = vpack.c.bf16 %v276_v37, %v275_v35 }
 0x1a4   :  { %801 = vmatprep.mubr.msk.f32.mxu1 %vm1043_vm0, %v1042_v2  ;;  %800 = vmatpush3.msra.mxu1 %v278_v57 }
 0x1a5   :  { %859 = vmatprep.subr.bf16.mxu1 %v1041_v1 }
 0x1aa   :  { %v1181_v41 = vpop.f32.mrb[2].mxu0 }
 0x1ab   :  { %v352_v42 = vpop.f32.mrb[3].mxu0 }
 0x276   :  { %v250_v43 = vpop.f32.mrb[0].mxu1 }
 0x277   :  { %255 = vst [vmem:[#allocation2] sm:$0xff] %v250_v43  ;;  %v252_v44 = vpop.f32.mrb[1].mxu1  ;;  %v629_v43 = vshrl.u32 %v87_v22, 7 }
 0x278   :  { %256 = vst [vmem:[#allocation2 + $0x8] sm:$0xff] %v252_v44 }
 0x279   :  { %v630_v44 = vsub.s32 2, %v629_v43 }
 0x27f   :  { %v280_v46 = vld [vmem:[#allocation2] ss:$8 sm:$0x3] }
 0x280   :  { %v356_v47 = vrot.slane %v280_v46, 1 }
 0x282   :  { %v358_v49 = vadd.f32 %v356_v47, %v352_v42 }
 0x284   :  { %v362_v50 = vadd.f32 %v360_v48, %v358_v49 }
 0x286   :  { %v364_v51 = vsel %vm363_vm3, %v362_v50, -inf }
 0x287   :  { %365 = vmax.xlane.f32.xlu0 %v364_v51 }
 0x314   :  { %v366_v52 = vpop.xlane.xlu0 %365 }
 0x315   :  { %v367_v53 = vsub.f32 %v362_v50, %v366_v52 }
 0x317   :  { %v368_v54 = vmul.f32 1.442695, %v367_v53 }
 0x319   :  { %896 = vpow2.f32 %v368_v54 }
 0x323   :  { %v897_v55 = vpop.eup %896 }
 0x324   :  { %v370_v56 = vsel %vm363_vm3, %v897_v55, 0.0 }
 0x325   :  { %371 = vadd.xlane.f32.xlu1 %v370_v56 }
 0x3b2   :  { %v372_v58 = vpop.xlane.xlu1 %371 }
 0x3b3   :  { %898 = vrcp.f32 %v372_v58 }
 0x3bd   :  { %v899_v61 = vpop.eup %898 }
 0x3be   :  { %v1193_v63 = vmul.f32 %v899_v61, %v897_v55  ;;  %v727_v55 = vsub.s32 0, %v629_v43 }
 0x3c0   :  { %802 = vmatmul.mubr.msk.f32.vlgmr.msra.gmra.mrb[2].mxu1 %vm375_vm4, %v1193_v63  ;;  %v728_v56 = vrot.slane %v1193_v63, %v727_v55 }
 0x3c1   :  { %861 = vmatpush3.bf16.msra.mxu1 %v860_v62  ;;  %812 = vmatprep.mubr.msk.f32.mxu1 %vm1043_vm0, %v1042_v2 }
 0x3c2   :  { %862 = vmatprep.subr.bf16.mxu1 %v1041_v1 }
 0x3c5   :  { %864 = vmatpush3.bf16.msra.mxu1 %v863_v4 }
 0x3c6   :  { %871 = vmatprep.subr.bf16.mxu1 %v1041_v1 }
 0x493   :  { %v445_v5 = vpop.f32.mrb[2].mxu1 }
 0x494   :  { %v803_v6 = vpop.f32.mrb[3].mxu1  ;;  %813 = vmatmul.mubr.msk.f32.vlgmr.msra.gmra.mrb[4].mxu1 %vm99_vm1, %v445_v5 }
 0x495   :  { %834 = vmatprep.mubr.msk.f32.mxu1 %vm1043_vm0, %v1042_v2  ;;  %873 = vmatpush3.bf16.msra.mxu1 %v872_v36 }
 0x496   :  { %874 = vmatprep.subr.bf16.mxu1 %v1041_v1 }
 0x499   :  { %876 = vmatpush3.bf16.msra.mxu1 %v875_v39 }
 0x567   :  { %v518_v14 = vpop.f32.mrb[4].mxu1 }
 0x568   :  { %v522_v15 = vadd.f32 %v518_v14, %v280_v46  ;;  %v814_v16 = vpop.f32.mrb[5].mxu1  ;;  %v631_v46 = vrot.slane %v1186_v45, %v630_v44 }
 0x56a   :  { %v525_v17 = vadd.f32 %v523_v13, %v522_v15 }
 0x56c   :  { %v526_v18 = vmax.f32 %v525_v17, 0.0 }
 0x56e   :  { %824 = vmatmul.mubr.msk.f32.vlgmr.msra.gmra.mrb[4].mxu0 %vm99_vm1, %v526_v18 }
 0x641   :  { %v596_v2 = vpop.f32.mrb[4].mxu0 }
 0x642   :  { %v597_v19 = vadd.f32 %v596_v2, %v1181_v41  ;;  %v825_v20 = vpop.f32.mrb[5].mxu0 }
 0x644   :  { %v600_v21 = vadd.f32 %v597_v19, %v1186_v45 }
 0x646   :  { %900 = vtanh.f32 %v600_v21  ;;  %v764_v24 = vmul.f32 -1.442695, %v600_v21 }
 0x648   :  { %902 = vpow2.f32 %v764_v24 }
 0x650   :  { %v901_v23 = vpop.eup %900 }
 0x651   :  { %610 = vrot.lane.b32.xlu1 %v901_v23, %s1044_s2 }
 0x652   :  { %v903_v25 = vpop.eup %902 }
 0x653   :  { %v604_v26 = vadd.f32 1.0, %v903_v25 }
 0x655   :  { %904 = vrcp.f32 %v604_v26 }
 0x65f   :  { %v905_v27 = vpop.eup %904 }
 0x660   :  { %v608_v30 = vmul.f32 %v905_v27, %v1171_v38 }
 0x6c3   :  { %v611_v28 = vpop.permute.xlu1 %610 }
 0x6c4   :  { %v613_v29 = vmul.f32 %v905_v27, %v611_v28 }
 0x6c6   :  { %615 = vrot.lane.b32.xlu1 %v613_v29, %s1045_s7 }
 0x738   :  { %v616_v31 = vpop.permute.xlu1 %615 }
 0x739   :  { %v618_v32 = vadd.f32 %v616_v31, %v608_v30 }
 0x73b   :  { %906 = vtanh.f32 %v618_v32 }
 0x745   :  { %v907_v40 = vpop.eup %906 }
 0x746   :  { %621 = vrot.lane.b32.xlu1 %v907_v40, %s1044_s2 }
 0x7b8   :  { %v622_v41 = vpop.permute.xlu1 %621 }
 0x7b9   :  { %v624_v42 = vmul.f32 %v905_v27, %v622_v41 }
 0x7bb   :  { %718 = vrot.lane.b32.xlu0 %v624_v42, %s1044_s2  ;;  %626 = vrot.lane.b32.xlu1 %v624_v42, %s1045_s7 }
 0x7bf   :  { %722 = vrot.lane.b32.xlu0 %v618_v32, %s1045_s7 }
 0x82d   :  { %v627_v38 = vpop.permute.xlu1 %626  ;;  %v719_v22 = vpop.permute.xlu0 %718 }
 0x82e   :  { %835 = vmatmul.mubr.msk.f32.vlgmr.msra.gmra.mrb[6].mxu1 %vm99_vm1, %v627_v38 }
 0x831   :  { %v723_v45 = vpop.permute.xlu0 %722 }
 0x901   :  { %v701_v47 = vpop.f32.mrb[6].mxu1 }
 0x902   :  { %v702_v48 = vadd.f32 %v701_v47, %v631_v46  ;;  %v836_v1 = vpop.f32.mrb[7].mxu1 }
 0x904   :  { %v706_v49 = vsel %vm705_vm5, %v702_v48, -inf }
 0x905   :  { %707 = vmax.xlane.f32.xlu1 %v706_v49 }
 0x992   :  { %v708_v50 = vpop.xlane.xlu1 %707 }
 0x993   :  { %v709_v51 = vsub.f32 %v702_v48, %v708_v50 }
 0x995   :  { %v710_v52 = vmul.f32 1.442695, %v709_v51 }
 0x997   :  { %908 = vpow2.f32 %v710_v52 }
 0x9a1   :  { %v909_v53 = vpop.eup %908 }
 0x9a2   :  { %v712_v54 = vsel %vm705_vm5, %v909_v53, 0.0 }
 0x9a3   :  { %713 = vadd.xlane.f32.xlu0 %v712_v54 }
 0x9b9   :  { %729 = vrot.lane.b32.xlu0 %v728_v56, %s1046_s18 }
 0xa30   :  { %v714_v57 = vpop.xlane.xlu0 %713 }
 0xa31   :  { %910 = vlog2.f32 %v714_v57 }
 0xa34   :  { %v730_v0 = vpop.permute.xlu0 %729 }
 0xa3b   :  { %v911_v58 = vpop.eup %910 }
 0xa3c   :  { %v716_v59 = vmul.f32 0.6931472, %v911_v58 }
 0xa3e   :  { %v717_v60 = vsub.f32 %v709_v51, %v716_v59 }
 0xa40   :  { %v732_v61 = vsel %vm99_vm1, %v717_v60, %v719_v22 }
 0xa41   :  { %v734_v62 = vsel %vm733_vm6, %v732_v61, %v723_v45 }
 0xa42   :  { %v736_v3 = vsel %vm735_vm7, %v734_v62, %v730_v0 }
 0xa43   :  { %v738_v63 = vsel %vm737_vm8, %v736_v3, 0.0 }
 0xa44   :  { %739 = vst [vmem:[#allocation11] sm:$0x1] %v738_v63 }
 0xa45   :  { %1011 = shalt.err (!%p1008_p8)
}
 0xa46   :  { %s1012_s20 = scalar_lea.hbm %s1235_s8, 128 }
 0xa47   :  { %p1013_p9 = scmp.ne.s32.totalorder %s1235_s8, %s1012_s20  ;;  %p1016_p10 = scmp.lt.u32.totalorder %s1012_s20, %s1235_s8 }
 0xa49   :  { %p1018_p11 = pnand %p1016_p10, %p1013_p9 }
 0xa4b   :  { %1021 = shalt.err (!%p1018_p11)
}
 0xa4c   :  { %749 = dma.vmem_to_hbm [thread:$0]  %s747_s21, 128, %s1235_s8, [#allocation5]  }
 0xa4d   :  { %1028 = dma.done.wait [#allocation5], 128  }
 0xa4e   :  { %1029 = vsyncadd [#allocation5], 4294967168 }
 0xa4f   :  { %753 = vsyncpa [#allocation4], 1 }
 0xa50   :  { %754 = vsyncpa [#allocation7], 1 }
 0xa51   :  { %755 = vsyncpa [#allocation10], 1 }
 0xa52   :  { %756 = vsyncpa [#allocation5], 1 }

</bundles_post_ra>
